<compile_context>
chip_gen: v7x
topology: tpu7x:2x2x1
jax: 0.10.0
libtpu: 0.0.40
codegen_flags: <defaults>
</compile_context>

<pallas_src>
import math

import jax
import jax.numpy as jnp
from jax.experimental import pallas as pl
from jax.experimental.pallas import tpu as pltpu


# ------------------------------ Pallas kernel -------------------------------

def _sft_fused_kernel(x_ref, inter_ref, w1_ref, w2g_ref, w2b_ref, o_ref):
    """One (batch, lane-tile) block of the whole SFT layer.

    x_ref:     (1, C,  tl)  f32   features to modulate
    inter_ref: (1, Cin, tl) f32   conditioning features
    w1_ref:    (2C, Cin)    bf16  [gamma_conv1 ; beta_conv1] stacked on rows
    w2g_ref:   (C, C)       bf16  gamma_conv2
    w2b_ref:   (C, C)       bf16  beta_conv2
    o_ref:     (1, C,  tl)  f32   x * gamma + beta
    """
    cout = o_ref.shape[1]

    a = inter_ref[0].astype(jnp.bfloat16)                      # (Cin, tl)

    # First 1x1 convs of both branches in one MXU pass.
    h = jnp.dot(w1_ref[...], a, preferred_element_type=jnp.float32)   # (2C, tl)
    # LeakyReLU(0.1) fused in the epilogue (VPU, free slot).
    h = jnp.where(h >= 0, h, 0.1 * h).astype(jnp.bfloat16)

    # Second 1x1 convs (branch-diagonal).
    gamma = jnp.dot(w2g_ref[...], h[:cout], preferred_element_type=jnp.float32)
    beta = jnp.dot(w2b_ref[...], h[cout:], preferred_element_type=jnp.float32)

    # SFT modulation fused into the same kernel: no extra HBM round trip.
    o_ref[0] = (x_ref[0] * gamma + beta).astype(o_ref.dtype)


def _pick_lane_tile(hw_padded, batch):
    """Largest lane tile that keeps >=4 grid programs (v7x megacore)."""
    for tl in (2048, 1024, 512, 256, 128):
        if hw_padded % tl == 0 and batch * (hw_padded // tl) >= 4:
            return tl
    return 128


# -------------------------------- wrapper ------------------------------------

@jax.jit
def sft_forward(params, x, inter):
    """SFT_layer forward.  x: (B, C, H, W), inter: (B, Cin, H, W) — NCHW f32."""
    B, C, H, W = x.shape
    Cin = inter.shape[1]
    HW = H * W
    HWp = ((HW + 127) // 128) * 128          # lane axis padded to multiple of 128
    tl = _pick_lane_tile(HWp, B)

    xf = x.reshape(B, C, HW)
    itf = inter.reshape(B, Cin, HW)
    if HWp != HW:
        pad = ((0, 0), (0, 0), (0, HWp - HW))
        xf = jnp.pad(xf, pad)
        itf = jnp.pad(itf, pad)

    # Concatenate the two first-layer weights so both branches share one read
    # of `inter` and one MXU pass (2C output rows instead of C).
    w1 = jnp.concatenate([params["g1"], params["b1"]], axis=0).astype(jnp.bfloat16)
    w2g = params["g2"].astype(jnp.bfloat16)
    w2b = params["b2"].astype(jnp.bfloat16)

    grid = (B, HWp // tl)
    out = pl.pallas_call(
        _sft_fused_kernel,
        out_shape=jax.ShapeDtypeStruct((B, C, HWp), jnp.float32),
        grid_spec=pltpu.PrefetchScalarGridSpec(
            num_scalar_prefetch=0,
            grid=grid,
            in_specs=[
                pl.BlockSpec((1, C, tl), lambda b, t: (b, 0, t)),      # x
                pl.BlockSpec((1, Cin, tl), lambda b, t: (b, 0, t)),    # inter
                pl.BlockSpec((2 * C, Cin), lambda b, t: (0, 0)),       # w1 (resident)
                pl.BlockSpec((C, C), lambda b, t: (0, 0)),             # w2 gamma
                pl.BlockSpec((C, C), lambda b, t: (0, 0)),             # w2 beta
            ],
            out_specs=pl.BlockSpec((1, C, tl), lambda b, t: (b, 0, t)),
        ),
        compiler_params=pltpu.CompilerParams(
            dimension_semantics=("parallel", "parallel"),
            vmem_limit_bytes=32 * 1024 * 1024,
        ),
    )(xf, itf, w1, w2g, w2b)

    return out[:, :, :HW].reshape(B, C, H, W)


# ----------------------------- params / reference ----------------------------

def init_sft_params(key, channels_in, channels_out):
    """1x1 conv weights (OIHW with kh=kw=1, squeezed), bias=False as in the spec."""
    k1, k2, k3, k4 = jax.random.split(key, 4)
    s1 = 1.0 / math.sqrt(channels_in)
    s2 = 1.0 / math.sqrt(channels_out)
    nrm = lambda k, shape, s: s * jax.random.normal(k, shape, jnp.float32)
    return {
        "g1": nrm(k1, (channels_out, channels_in), s1),
        "g2": nrm(k2, (channels_out, channels_out), s2),
        "b1": nrm(k3, (channels_out, channels_in), s1),
        "b2": nrm(k4, (channels_out, channels_out), s2),
    }


def sft_reference(params, x, inter):
    """Pure-JAX f32 reference (matches the PyTorch forward)."""
    conv1x1 = lambda w, t: jnp.einsum("oi,bihw->bohw", w, t)
    lrelu = lambda t: jnp.where(t >= 0, t, 0.1 * t)
    gamma = conv1x1(params["g2"], lrelu(conv1x1(params["g1"], inter)))
    beta = conv1x1(params["b2"], lrelu(conv1x1(params["b1"], inter)))
    return x * gamma + beta


# ----------------------------------- main ------------------------------------

if __name__ == "__main__":
    B, CIN, COUT, H, W = 2, 32, 16, 16, 16

    key = jax.random.PRNGKey(0)
    kx, ki, kp = jax.random.split(key, 3)
    x = jax.random.normal(kx, (B, COUT, H, W), jnp.float32)
    inter = jax.random.normal(ki, (B, CIN, H, W), jnp.float32)
    params = init_sft_params(kp, CIN, COUT)

    out = sft_forward(params, x, inter)
    out = jax.block_until_ready(out)

    assert out.shape == x.shape, out.shape
    assert bool(jnp.all(jnp.isfinite(out)))

    ref = sft_reference(params, x, inter)
    max_err = float(jnp.max(jnp.abs(out - ref)))
    # bf16 MXU operands with f32 accumulation: small tolerance vs f32 reference.
    assert max_err < 1e-1, max_err

    print("KERNEL_OK")
</pallas_src>

<mosaic_0001>
module attributes {stable_mosaic.version = 11 : i64} {
  func.func @_sft_fused_kernel(%arg0: i32, %arg1: i32, %arg2: memref<1x16x128xf32, #tpu.memory_space<vmem>>, %arg3: memref<1x32x128xf32, #tpu.memory_space<vmem>>, %arg4: memref<32x32xbf16, #tpu.memory_space<vmem>>, %arg5: memref<16x16xbf16, #tpu.memory_space<vmem>>, %arg6: memref<16x16xbf16, #tpu.memory_space<vmem>>, %arg7: memref<1x16x128xf32, #tpu.memory_space<vmem>>) attributes {dimension_semantics = [#tpu.dimension_semantics<parallel>, #tpu.dimension_semantics<parallel>], iteration_bounds = array<i64: 2, 2>, scalar_prefetch = 0 : i64, scratch_operands = 0 : i64, tpu.core_type = #tpu.core_type<tc>, window_params = [{transform_indices = @transform_0, window_bounds = array<i64: 1, 16, 128>}, {transform_indices = @transform_1, window_bounds = array<i64: 1, 32, 128>}, {pipeline_mode = #tpu.pipeline_mode<synchronous>, transform_indices = @transform_2, window_bounds = array<i64: 32, 32>}, {pipeline_mode = #tpu.pipeline_mode<synchronous>, transform_indices = @transform_3, window_bounds = array<i64: 16, 16>}, {pipeline_mode = #tpu.pipeline_mode<synchronous>, transform_indices = @transform_4, window_bounds = array<i64: 16, 16>}, {transform_indices = @transform_5, window_bounds = array<i64: 1, 16, 128>}]} {
    %c0 = arith.constant 0 : index
    %c0_0 = arith.constant 0 : index
    %c0_1 = arith.constant 0 : index
    %0 = vector.load %arg3[%c0, %c0_0, %c0_1] : memref<1x32x128xf32, #tpu.memory_space<vmem>>, vector<1x32x128xf32>
    %1 = vector.shape_cast %0 : vector<1x32x128xf32> to vector<32x128xf32>
    %2 = arith.truncf %1 : vector<32x128xf32> to vector<32x128xbf16>
    %c0_2 = arith.constant 0 : index
    %c0_3 = arith.constant 0 : index
    %3 = vector.load %arg4[%c0_2, %c0_3] : memref<32x32xbf16, #tpu.memory_space<vmem>>, vector<32x32xbf16>
    %cst = arith.constant dense<0.000000e+00> : vector<32x128xf32>
    %4 = tpu.matmul %3, %2, %cst {dimension_numbers = #tpu.dot_dimension_numbers<[1], [0], [0], [1], [0, 0, 1, 1], [], []>} : vector<32x32xbf16>, vector<32x128xbf16>, vector<32x128xf32> -> vector<32x128xf32>
    %cst_4 = arith.constant 0.000000e+00 : f32
    %5 = vector.broadcast %cst_4 : f32 to vector<32x128xf32>
    %6 = arith.cmpf oge, %4, %5 : vector<32x128xf32>
    %cst_5 = arith.constant 1.000000e-01 : f32
    %7 = vector.broadcast %cst_5 : f32 to vector<32x128xf32>
    %8 = arith.mulf %7, %4 : vector<32x128xf32>
    %9 = arith.select %6, %4, %8 : vector<32x128xi1>, vector<32x128xf32>
    %10 = arith.truncf %9 : vector<32x128xf32> to vector<32x128xbf16>
    %c0_6 = arith.constant 0 : index
    %c0_7 = arith.constant 0 : index
    %11 = vector.load %arg5[%c0_6, %c0_7] : memref<16x16xbf16, #tpu.memory_space<vmem>>, vector<16x16xbf16>
    %12 = vector.extract_strided_slice %10 {offsets = [0, 0], sizes = [16, 128], strides = [1, 1]} : vector<32x128xbf16> to vector<16x128xbf16>
    %cst_8 = arith.constant dense<0.000000e+00> : vector<16x128xf32>
    %13 = tpu.matmul %11, %12, %cst_8 {dimension_numbers = #tpu.dot_dimension_numbers<[1], [0], [0], [1], [0, 0, 1, 1], [], []>} : vector<16x16xbf16>, vector<16x128xbf16>, vector<16x128xf32> -> vector<16x128xf32>
    %c0_9 = arith.constant 0 : index
    %c0_10 = arith.constant 0 : index
    %14 = vector.load %arg6[%c0_9, %c0_10] : memref<16x16xbf16, #tpu.memory_space<vmem>>, vector<16x16xbf16>
    %15 = vector.extract_strided_slice %10 {offsets = [16, 0], sizes = [16, 128], strides = [1, 1]} : vector<32x128xbf16> to vector<16x128xbf16>
    %cst_11 = arith.constant dense<0.000000e+00> : vector<16x128xf32>
    %16 = tpu.matmul %14, %15, %cst_11 {dimension_numbers = #tpu.dot_dimension_numbers<[1], [0], [0], [1], [0, 0, 1, 1], [], []>} : vector<16x16xbf16>, vector<16x128xbf16>, vector<16x128xf32> -> vector<16x128xf32>
    %c0_12 = arith.constant 0 : index
    %c0_13 = arith.constant 0 : index
    %c0_14 = arith.constant 0 : index
    %17 = vector.load %arg2[%c0_12, %c0_13, %c0_14] : memref<1x16x128xf32, #tpu.memory_space<vmem>>, vector<1x16x128xf32>
    %18 = vector.shape_cast %17 : vector<1x16x128xf32> to vector<16x128xf32>
    %19 = arith.mulf %18, %13 : vector<16x128xf32>
    %20 = arith.addf %19, %16 : vector<16x128xf32>
    %c0_15 = arith.constant 0 : index
    %c0_16 = arith.constant 0 : index
    %c0_17 = arith.constant 0 : index
    %21 = vector.load %arg7[%c0_15, %c0_16, %c0_17] : memref<1x16x128xf32, #tpu.memory_space<vmem>>, vector<1x16x128xf32>
    %22 = vector.shape_cast %21 : vector<1x16x128xf32> to vector<16x128xf32>
    %23 = vector.shape_cast %20 : vector<16x128xf32> to vector<1x16x128xf32>
    tpu.vector_store %arg7[%c0_15, %c0_16, %c0_17], %23 {strides = array<i32>} : memref<1x16x128xf32, #tpu.memory_space<vmem>>, vector<1x16x128xf32>,
    return
  }
  func.func @transform_0(%arg0: i32, %arg1: i32) -> (i32, i32, i32) {
    %c0_i32 = arith.constant 0 : i32
    %c0_i32_0 = arith.constant 0 : i32
    return %arg0, %c0_i32, %arg1 : i32, i32, i32
  }
  func.func @transform_1(%arg0: i32, %arg1: i32) -> (i32, i32, i32) {
    %c0_i32 = arith.constant 0 : i32
    %c0_i32_0 = arith.constant 0 : i32
    return %arg0, %c0_i32, %arg1 : i32, i32, i32
  }
  func.func @transform_2(%arg0: i32, %arg1: i32) -> (i32, i32) {
    %c0_i32 = arith.constant 0 : i32
    %c0_i32_0 = arith.constant 0 : i32
    %c0_i32_1 = arith.constant 0 : i32
    return %c0_i32, %c0_i32_0 : i32, i32
  }
  func.func @transform_3(%arg0: i32, %arg1: i32) -> (i32, i32) {
    %c0_i32 = arith.constant 0 : i32
    %c0_i32_0 = arith.constant 0 : i32
    %c0_i32_1 = arith.constant 0 : i32
    return %c0_i32, %c0_i32_0 : i32, i32
  }
  func.func @transform_4(%arg0: i32, %arg1: i32) -> (i32, i32) {
    %c0_i32 = arith.constant 0 : i32
    %c0_i32_0 = arith.constant 0 : i32
    %c0_i32_1 = arith.constant 0 : i32
    return %c0_i32, %c0_i32_0 : i32, i32
  }
  func.func @transform_5(%arg0: i32, %arg1: i32) -> (i32, i32, i32) {
    %c0_i32 = arith.constant 0 : i32
    %c0_i32_0 = arith.constant 0 : i32
    return %arg0, %c0_i32, %arg1 : i32, i32, i32
  }
}

</mosaic_0001>

<bundles_post_ra>
// kernel: sft_forward.1
= control target key start
LH: loop header
LB: loop body
LE: loop exit
PB: predicated region body
PF: predicated region fallthrough
CT: control target
= control target key end

     0   :  { %s891_s18 = smov 0   ;;  %s893_s19 = smov 0   ;;  %s1019_s0 = inlined_call_operand.vmem [shape: f32[2,16,256], index: 0, kind: input, shape index: {}]   ;;  %s1020_s1 = inlined_call_operand.vmem [shape: f32[2,32,256], index: 1, kind: input, shape index: {}]   ;;  %s1021_s2 = inlined_call_operand.vmem [shape: bf16[32,32], index: 2, kind: input, shape index: {}]   ;;  %s1022_s3 = inlined_call_operand.vmem [shape: bf16[16,16], index: 3, kind: input, shape index: {}]   ;;  %s1023_s4 = inlined_call_operand.vmem [shape: bf16[16,16], index: 4, kind: input, shape index: {}]   ;;  %s1024_s5 = inlined_call_operand.vmem [shape: f32[2,16,256], index: 5, kind: output, shape index: {}]  }
   0x1   :  { %s895_s20 = smov 0   ;;  %s897_s21 = smov 0  }
   0x2   :  { %s899_s22 = smov 0   ;;  %s901_s23 = smov 0  }
   0x3   :  { %s903_s24 = smov 0  }
   0x4 LB: > { %s24_s25 = sadd.s32 1, %s849_s22  ;;  %s27_s26 = sadd.s32 1, %s853_s23  ;;  %s857_s24 = sphi %s903_s24, %s15_s24   ;;  %s853_s23 = sphi %s901_s23, %s1032_s23   ;;  %s849_s22 = sphi %s899_s22, %s1031_s22   ;;  %s845_s21 = sphi %s897_s21, %s1030_s21   ;;  %s841_s20 = sphi %s895_s20, %s1029_s20   ;;  %s837_s19 = sphi %s893_s19, %s1028_s19   ;;  %s833_s18 = sphi %s891_s18, %s1027_s18  }
   0x5   : > { %p25_p0 = scmp.ge.s32.totalorder %s24_s25, 2  ;;  %s686_s27 = sadd.s32 4294967295, %s857_s24  }
   0x6   : > { %p43_p1 = scmp.ne.s32.totalorder %s837_s19, %s833_s18  ;;  %p44_p2 = scmp.eq.s32.totalorder %s857_s24, 0 }
   0x7   : > { %s1034_s25 = smov (%p25_p0, %s24_s25), 0  ;;  %s1036_s26 = smov (!%p25_p0, %s27_s26), %s853_s23 }
   0x8   : > { %p29_p3 = scmp.ge.s32.totalorder %s1036_s26, 2  ;;  %p166_p4 = scmp.eq.s32.totalorder %s686_s27, 3 }
   0x9   : > { %s32_s28 = ssub.s32 %s849_s22, %s1034_s25  ;;  %p937_p5 = por %p44_p2, %p43_p1 }
   0xa   : > { %s1038_s26 = smov (%p29_p3, %s1036_s26), 0  ;;  %p943_p6 = por %p166_p4, %p43_p1 }
   0xb   : > { %s31_s6 = ssub.s32 %s853_s23, %s1038_s26  ;;  %s36_s8 = sadd.s32 1, %s837_s19 }
   0xc   : > { %s33_s7 = sor.u32 %s32_s28, %s31_s6  ;;  %p689_p8 = scmp.ge.s32.totalorder %s857_s24, 4 }
   0xd   : > { %p34_p7 = scmp.eq.s32.totalorder %s33_s7, 0 }
   0xe   : > { %197 = sbr.rel (%p689_p8) target bundleno = 36 (0x24), region = 28 }
   0xf   : > { %s951_s9 = scalar_select %p34_p7, %s837_s19, %s36_s8  }
  0x15   : > { %200 = sbr.rel (!%p937_p5) target bundleno = 28 (0x1c), region = 32  ;;  %s202_s10 = sand.u32 (%p937_p5), 1, %s837_s19  }
  0x16   : > { %s691_s11 = sshll.u32 (%p937_p5), %s853_s23, 2  ;;  %s690_s12 = sshll.u32 (%p937_p5), %s202_s10, 4 }
  0x17   : > { %s206_s13 = sadd.s32 (%p937_p5), %s849_s22, %s691_s11  ;;  %s204_s27 = scalar_lea.vmem (%p937_p5), [#allocation2], %s690_s12 }
  0x18   : > { %s692_s14 = sshll.u32 (%p937_p5), %s206_s13, 3 }
  0x19   : > { %s208_s17 = scalar_lea.vmem (%p937_p5), %s1019_s0, %s692_s14 }
  0x1a   : > { %v238_v0 = vld [vmem:[%s208_s17] sm:$0xff] (%p937_p5)  ;;  %v240_v1 = vld [vmem:[%s208_s17 + $0x10] sm:$0xff] (%p937_p5) }
  0x1b   : > { %239 = vst [vmem:[%s204_s27] sm:$0xff] (%p937_p5), %v238_v0  ;;  %241 = vst [vmem:[%s204_s27 + $0x8] sm:$0xff] (%p937_p5), %v240_v1 }
  0x1c PF: > { %247 = sbr.rel (!%p937_p5) target bundleno = 36 (0x24), region = 70  ;;  %s249_s28 = sand.u32 (%p937_p5), 1, %s837_s19  }
  0x1d   : > { %s694_s6 = sshll.u32 (%p937_p5), %s853_s23, 3  ;;  %s693_s7 = sshll.u32 (%p937_p5), %s249_s28, 5 }
  0x1e   : > { %s253_s8 = sadd.s32 (%p937_p5), %s849_s22, %s694_s6  ;;  %s251_s12 = scalar_lea.vmem (%p937_p5), [#allocation3], %s693_s7 }
  0x1f   : > { %s695_s10 = sshll.u32 (%p937_p5), %s253_s8, 3 }
  0x20   : > { %s255_s14 = scalar_lea.vmem (%p937_p5), %s1020_s1, %s695_s10 }
  0x21   : > { %v289_v2 = vld [vmem:[%s255_s14] sm:$0xff] (%p937_p5)  ;;  %v291_v3 = vld [vmem:[%s255_s14 + $0x10] sm:$0xff] (%p937_p5) }
  0x22   : > { %v293_v4 = vld [vmem:[%s255_s14 + $0x20] sm:$0xff] (%p937_p5)  ;;  %290 = vst [vmem:[%s251_s12] sm:$0xff] (%p937_p5), %v289_v2  ;;  %292 = vst [vmem:[%s251_s12 + $0x8] sm:$0xff] (%p937_p5), %v291_v3  ;;  %v295_v5 = vld [vmem:[%s255_s14 + $0x30] sm:$0xff] (%p937_p5) }
  0x23   : > { %294 = vst [vmem:[%s251_s12 + $0x10] sm:$0xff] %v293_v4  ;;  %296 = vst [vmem:[%s251_s12 + $0x18] sm:$0xff] %v295_v5 }
  0x24 PF: > { %p696_p9 = scmp.ge.s32.totalorder %s857_s24, 1  ;;  %p301_p10 = scmp.lt.s32.totalorder %s857_s24, 5 }
  0x26   : > { %p302_p11 = pnand %p696_p9, %p301_p10 }
  0x27   : > { %s308_s29 = sand.u32 (!%p302_p11), 1, %s833_s18   ;;  %v799_v6 = vld [vmem:[%s1021_s2] sm:$0xff] (!%p302_p11)   ;;  %vm366_vm0 = vcmask (!%p302_p11), 261120   ;;  %v800_v13 = vld [vmem:[%s1021_s2 + $0x8] sm:$0xff] (!%p302_p11)   ;;  %v859_v14 = vmov (!%p302_p11), 0.0   ;;  %vm860_vm1 = vmmov (!%p302_p11), 0  }
  0x28   : > { %305 = sbr.rel (%p302_p11) target bundleno = 509 (0x1fd), region = 108  ;;  %s698_s17 = sshll.u32 (!%p302_p11), %s308_s29, 5  ;;  %725 = vmatprep.mubr.msk.bf16.mxu0 (!%p302_p11), %vm366_vm0, %v799_v6  ;;  %729 = vmatprep.subr.bf16.mxu1 (!%p302_p11), %v859_v14  ;;  %v801_v29 = vld [vmem:[%s1022_s3] sm:$0xff] (!%p302_p11)   ;;  %vm443_vm6 = vcmask (!%p302_p11), 130048  }
  0x29   : > { %s317_s27 = scalar_lea.vmem (!%p302_p11), [#allocation3], %s698_s17  ;;  %731 = vmatprep.mubr.msk.bf16.mxu1 (!%p302_p11), %vm860_vm1, %v859_v14  ;;  %v802_v30 = vld [vmem:[%s1023_s4] sm:$0xff] (!%p302_p11)   ;;  %s697_s13 = sshll.u32 (!%p302_p11), %s308_s29, 4 }
  0x2a   : > { %v346_v7 = vld [vmem:[%s317_s27] sm:$0xff] (!%p302_p11)  ;;  %v347_v8 = vld [vmem:[%s317_s27 + $0x8] sm:$0xff] (!%p302_p11)  ;;  %v348_v9 = vld [vmem:[%s317_s27 + $0x10] sm:$0xff] (!%p302_p11)  ;;  %s310_s14 = scalar_lea.vmem (!%p302_p11), [#allocation2], %s697_s13  ;;  %s344_s12 = scalar_lea.vmem (!%p302_p11), [#allocation4], %s697_s13 }
  0x2b   : > { %v350_v10 = vpack.c.bf16 (!%p302_p11), %v347_v8, %v346_v7  ;;  %v349_v11 = vld [vmem:[%s317_s27 + $0x18] sm:$0xff] (!%p302_p11)  ;;  %v539_v35 = vld [vmem:[%s310_s14] sm:$0xff] (!%p302_p11) }
  0x2c   : > { %v351_v12 = vpack.c.bf16 (!%p302_p11), %v349_v11, %v348_v9  ;;  %v540_v36 = vld [vmem:[%s310_s14 + $0x8] sm:$0xff] (!%p302_p11) }
  0x2d   : > { %721 = vmatprep.subr.bf16.mxu0 (!%p302_p11), %v350_v10 }
  0x2e   : > { %722 = vmatpush3.bf16.msra.mxu0 (!%p302_p11), %v350_v10 }
  0x2f   : > { %723 = vmatprep.subr.bf16.mxu0 %v351_v12  ;;  %s709_s18 = sshll.u32 (%p943_p6), %s845_s21, 2 }
  0x30   : > { %s555_s29 = sadd.s32 (%p943_p6), %s841_s20, %s709_s18 }
  0x31   : > { %s710_s15 = sshll.u32 (%p943_p6), %s555_s29, 3 }
  0x32   : > { %724 = vmatpush3.bf16.msra.mxu0 %v351_v12  ;;  %s557_s27 = scalar_lea.vmem (%p943_p6), %s1024_s5, %s710_s15 }
  0x35   : > { %726 = vmatmul.mubr.msk.bf16.vlgmr.msra.gmra.mrb[0].mxu0 %vm366_vm0, %v800_v13 }
 0x108   : > { %v727_v15 = vpop.f32.mrb[0].mxu0 }
 0x109   : > { %v428_v16 = vmul.f32 0.1, %v727_v15  ;;  %v407_v17 = vpop.f32.mrb[1].mxu0  ;;  %vm424_vm2 = vcmp.ge.f32.partialorder %v727_v15, 0.0 }
 0x10a   : > { %v426_v18 = vmul.f32 0.1, %v407_v17  ;;  %v728_v19 = vpop.f32.mrb[2].mxu0  ;;  %vm422_vm3 = vcmp.ge.f32.partialorder %v407_v17, 0.0 }
 0x10b   : > { %vm425_vm4 = vcmp.ge.f32.partialorder %v728_v19, 0.0  ;;  %v429_v20 = vmul.f32 0.1, %v728_v19  ;;  %v410_v21 = vpop.f32.mrb[3].mxu0  ;;  %v432_v23 = vsel %vm424_vm2, %v727_v15, %v428_v16 }
 0x10c   : > { %vm423_vm5 = vcmp.ge.f32.partialorder %v410_v21, 0.0  ;;  %v427_v22 = vmul.f32 0.1, %v410_v21  ;;  %v430_v27 = vsel %vm422_vm3, %v407_v17, %v426_v18 }
 0x10d   : > { %v433_v24 = vsel %vm425_vm4, %v728_v19, %v429_v20 }
 0x10e   : > { %v435_v25 = vpack.c.bf16 %v433_v24, %v432_v23  ;;  %v431_v26 = vsel %vm423_vm5, %v410_v21, %v427_v22 }
 0x10f   : > { %v434_v28 = vpack.c.bf16 %v431_v26, %v430_v27 }
 0x111   : > { %730 = vmatpush3.bf16.msra.mxu1 %v434_v28 }
 0x112   : > { %735 = vmatprep.subr.bf16.mxu1 %v859_v14 }
 0x114   : > { %732 = vmatmul.mubr.msk.bf16.vlgmr.msra.gmra.mrb[0].mxu1 %vm443_vm6, %v801_v29 }
 0x115   : > { %736 = vmatpush3.bf16.msra.mxu1 %v435_v25  ;;  %737 = vmatprep.mubr.msk.bf16.mxu1 %vm860_vm1, %v859_v14 }
 0x11c   : > { %738 = vmatmul.mubr.msk.bf16.vlgmr.msra.gmra.mrb[4].mxu1 %vm443_vm6, %v802_v30 }
 0x1e7   : > { %v481_v31 = vpop.f32.mrb[0].mxu1 }
 0x1e8   : > { %v733_v32 = vpop.f32.mrb[1].mxu1  ;;  %v541_v37 = vmul.f32 %v539_v35, %v481_v31 }
 0x1e9   : > { %v484_v33 = vpop.f32.mrb[2].mxu1 }
 0x1ea   : > { %v734_v34 = vpop.f32.mrb[3].mxu1  ;;  %v542_v39 = vmul.f32 %v540_v36, %v484_v33 }
 0x1ee   : > { %553 = sbr.rel (!%p943_p6) target bundleno = 509 (0x1fd), region = 120 }
 0x1ef   : > { %v532_v38 = vpop.f32.mrb[4].mxu1 }
 0x1f0   : > { %v543_v40 = vadd.f32 %v541_v37, %v532_v38  ;;  %v739_v41 = vpop.f32.mrb[5].mxu1 }
 0x1f1   : > { %v535_v42 = vpop.f32.mrb[6].mxu1 }
 0x1f2   : > { %545 = vst [vmem:[%s344_s12] sm:$0xff] %v543_v40  ;;  %v544_v43 = vadd.f32 %v542_v39, %v535_v42  ;;  %v740_v44 = vpop.f32.mrb[7].mxu1 }
 0x1f4   : > { %546 = vst [vmem:[%s344_s12 + $0x8] sm:$0xff] %v544_v43 }
 0x1f9   : > { %v587_v45 = vld [vmem:[%s344_s12] sm:$0xff] }
 0x1fa   : > { %588 = vst [vmem:[%s557_s27] sm:$0xff] %v587_v45 }
 0x1fb   : > { %v589_v46 = vld [vmem:[%s344_s12 + $0x8] sm:$0xff] }
 0x1fc   : > { %590 = vst [vmem:[%s557_s27 + $0x10] sm:$0xff] %v589_v46 }
 0x1fd PF: > { %s15_s24 = sadd.s32 1, %s857_s24   ;;  %s1027_s18 = smov %s837_s19 }
 0x1fe   : > { %p12_p12 = scmp.ge.s32.totalorder %s15_s24, 6   ;;  %s1028_s19 = smov %s951_s9 }
 0x1ff   : > { %s1029_s20 = smov %s849_s22  ;;  %s1030_s21 = smov %s853_s23 }
 0x200   : > { %s1031_s22 = smov %s1034_s25  ;;  %s1032_s23 = smov %s1038_s26 }
 0x201   :  { %14 = sbr.rel (!%p12_p12) target bundleno = 4 (0x4), region = 197 }

</bundles_post_ra>
